<compile_context>
chip_gen: v7x
topology: tpu7x:2x2x1
jax: 0.10.0
libtpu: 0.0.40
codegen_flags: <defaults>
</compile_context>

<pallas_src>
import functools

import jax
import jax.numpy as jnp
from jax.experimental import pallas as pl
from jax.experimental.pallas import tpu as pltpu

# encoder/decoder layer dims, matching the PyTorch module
ENC_DIMS = [28 * 28, 128, 64, 12, 3]
DEC_DIMS = [3, 12, 64, 128, 28 * 28]

D_IN = 28 * 28  # 784


def _round_up(x, m):
    return ((x + m - 1) // m) * m


# --------------------------------------------------------------------------- #
# Kernel
# --------------------------------------------------------------------------- #
def _ae_kernel(x_ref, s1, s2, s3, s4, s5, s6, s7, o_ref, *,
               compute_dtype, in_dims):
    """7 fused linear layers: ReLU x6, Tanh on the last.

    Each slab ref is (round_up(n_in, 8) + 1, n_out): rows [:n_in] are W,
    the last (sublane-aligned) row is the bias.
    """
    def linear(h, slab_ref, n_in):
        last = slab_ref.shape[0] - 1
        w = slab_ref[:n_in, :]                       # (n_in, n_out), compute dtype
        b = slab_ref[last:, :].astype(jnp.float32)   # (1, n_out)
        acc = jnp.dot(h.astype(compute_dtype), w,
                      preferred_element_type=jnp.float32)
        return acc + b

    slabs = (s1, s2, s3, s4, s5, s6, s7)

    h = x_ref[...]                                   # already compute dtype
    for idx in range(6):                             # Linear + ReLU x6
        h = jnp.maximum(linear(h, slabs[idx], in_dims[idx]), 0.0)
    h = jnp.tanh(linear(h, slabs[6], in_dims[6]))    # final Linear + Tanh
    o_ref[...] = h.astype(o_ref.dtype)


# --------------------------------------------------------------------------- #
# Wrapper
# --------------------------------------------------------------------------- #
def _make_slab(w, b, dtype):
    """Pack W (n_in, n_out) and b (1, n_out) into one slab; bias on an aligned row."""
    n_in, n_out = w.shape
    rows = _round_up(n_in, 8)
    slab = jnp.zeros((rows + 1, n_out), jnp.float32)
    slab = slab.at[:n_in, :].set(w)
    slab = slab.at[rows, :].set(b.reshape(-1))
    return slab.astype(dtype)


def _fold_linear(p_first, p_second):
    """Fold Linear(a->b) followed directly by Linear(b->c) (no activation in between)."""
    (w1, b1), (w2, b2) = p_first, p_second
    w = w1 @ w2
    b = b1 @ w2 + b2
    return w, b


def autoencoder_forward(x, params, *, batch_tile=1024, use_bf16_matmul=True):
    """x: (B, 784) float32.  params: list of 8 (W, b) with W:(in,out), b:(1,out)."""
    B, D = x.shape
    assert D == D_IN
    assert batch_tile % 8 == 0
    compute_dtype = jnp.bfloat16 if use_bf16_matmul else jnp.float32

    # Fold the activation-free 12->3 / 3->12 bottleneck into a single 12x12 linear.
    folded = list(params[:3]) + [_fold_linear(params[3], params[4])] + list(params[5:])
    slabs = [_make_slab(w, b, compute_dtype) for (w, b) in folded]
    in_dims = tuple(w.shape[0] for (w, _) in folded)   # (784,128,64,12,12,64,128)

    # Tile selection: big enough to feed the MXU, never larger than the rounded
    # batch; for large single-tile batches split into >=2 grid steps so both
    # v7x TensorCores get work under dimension_semantics=("parallel",).
    eff_tile = min(batch_tile, _round_up(B, 8))
    if B >= 256 and _round_up(B, eff_tile) == eff_tile:
        eff_tile = max(8, _round_up(_round_up(B, 8) // 2, 8))
    B_pad = _round_up(B, eff_tile)
    if B_pad != B:
        x = jnp.pad(x, ((0, B_pad - B), (0, 0)))
    x = x.astype(compute_dtype)   # bf16 input stream (halves HBM read traffic)

    # x / output tiled over the batch; all 7 slabs are whole blocks with a
    # constant index_map (VMEM-resident across grid steps).
    in_specs = [pl.BlockSpec((eff_tile, D_IN), lambda i: (i, 0))]
    in_specs += [pl.BlockSpec(s.shape, lambda i: (0, 0)) for s in slabs]
    out_spec = pl.BlockSpec((eff_tile, D_IN), lambda i: (i, 0))

    kernel = functools.partial(_ae_kernel,
                               compute_dtype=compute_dtype, in_dims=in_dims)

    out = pl.pallas_call(
        kernel,
        out_shape=jax.ShapeDtypeStruct((B_pad, D_IN), compute_dtype),
        grid_spec=pltpu.PrefetchScalarGridSpec(
            num_scalar_prefetch=0,
            grid=(B_pad // eff_tile,),
            in_specs=in_specs,
            out_specs=out_spec,
        ),
        compiler_params=pltpu.CompilerParams(
            dimension_semantics=("parallel",),
            vmem_limit_bytes=32 * 1024 * 1024,
        ),
    )(x, *slabs)

    return out[:B]


# --------------------------------------------------------------------------- #
# Reference + init
# --------------------------------------------------------------------------- #
def init_params(key):
    """Deterministic init mimicking PyTorch nn.Linear default U[-1/sqrt(fan_in), +]."""
    params = []
    dims = list(zip(ENC_DIMS[:-1], ENC_DIMS[1:])) + list(zip(DEC_DIMS[:-1], DEC_DIMS[1:]))
    for (fan_in, fan_out) in dims:
        key, kw, kb = jax.random.split(key, 3)
        bound = 1.0 / (fan_in ** 0.5)
        w = jax.random.uniform(kw, (fan_in, fan_out), jnp.float32, -bound, bound)
        b = jax.random.uniform(kb, (1, fan_out), jnp.float32, -bound, bound)
        params.append((w, b))
    return params


def reference_forward(x, params):
    """Pure-JAX reference matching the PyTorch module's activation schedule."""
    h = x
    n = len(params)
    for idx, (w, b) in enumerate(params):
        h = h @ w + b
        if idx == n - 1:
            h = jnp.tanh(h)              # final decoder layer: Tanh
        elif idx == len(ENC_DIMS) - 2:
            pass                         # last encoder layer: no activation
        else:
            h = jnp.maximum(h, 0.0)      # hidden layers: ReLU
    return h


if __name__ == "__main__":
    key = jax.random.PRNGKey(0)
    kx, kx2, kp = jax.random.split(key, 3)
    params = init_params(kp)

    # Small correctness check (single tile, grid=1) -- default bf16 MXU path.
    B = 8
    x = jax.random.normal(kx, (B, D_IN), jnp.float32)
    ref = reference_forward(x, params)
    out = jax.block_until_ready(autoencoder_forward(x, params))
    assert out.shape == (B, D_IN)
    assert jnp.allclose(out.astype(jnp.float32), ref, atol=3e-2, rtol=3e-2), \
        "mismatch vs reference (bf16 path)"

    # fp32 debug path: tight structural check (fold / slabs / padding logic).
    out32 = jax.block_until_ready(
        autoencoder_forward(x, params, use_bf16_matmul=False))
    assert jnp.allclose(out32, ref, atol=1e-4, rtol=1e-4), \
        "mismatch vs reference (fp32 debug path)"

    # Ragged / multi-step grid check (B=40, batch_tile=16 -> pad to 48, grid=3).
    B2 = 40
    x2 = jax.random.normal(kx2, (B2, D_IN), jnp.float32)
    out2 = jax.block_until_ready(autoencoder_forward(x2, params, batch_tile=16))
    ref2 = reference_forward(x2, params)
    assert out2.shape == (B2, D_IN)
    assert jnp.allclose(out2.astype(jnp.float32), ref2, atol=3e-2, rtol=3e-2), \
        "mismatch vs reference (B=40)"

    print("KERNEL_OK")
</pallas_src>

<mosaic_0001>
module attributes {stable_mosaic.version = 11 : i64} {
  func.func @_ae_kernel(%arg0: i32, %arg1: memref<8x784xbf16, #tpu.memory_space<vmem>>, %arg2: memref<785x128xbf16, #tpu.memory_space<vmem>>, %arg3: memref<129x64xbf16, #tpu.memory_space<vmem>>, %arg4: memref<65x12xbf16, #tpu.memory_space<vmem>>, %arg5: memref<17x12xbf16, #tpu.memory_space<vmem>>, %arg6: memref<17x64xbf16, #tpu.memory_space<vmem>>, %arg7: memref<65x128xbf16, #tpu.memory_space<vmem>>, %arg8: memref<129x784xbf16, #tpu.memory_space<vmem>>, %arg9: memref<8x784xbf16, #tpu.memory_space<vmem>>) attributes {dimension_semantics = [#tpu.dimension_semantics<parallel>], iteration_bounds = array<i64: 1>, scalar_prefetch = 0 : i64, scratch_operands = 0 : i64, tpu.core_type = #tpu.core_type<tc>, window_params = [{transform_indices = @transform_0, window_bounds = array<i64: 8, 784>}, {pipeline_mode = #tpu.pipeline_mode<synchronous>, transform_indices = @transform_1, window_bounds = array<i64: 785, 128>}, {pipeline_mode = #tpu.pipeline_mode<synchronous>, transform_indices = @transform_2, window_bounds = array<i64: 129, 64>}, {pipeline_mode = #tpu.pipeline_mode<synchronous>, transform_indices = @transform_3, window_bounds = array<i64: 65, 12>}, {pipeline_mode = #tpu.pipeline_mode<synchronous>, transform_indices = @transform_4, window_bounds = array<i64: 17, 12>}, {pipeline_mode = #tpu.pipeline_mode<synchronous>, transform_indices = @transform_5, window_bounds = array<i64: 17, 64>}, {pipeline_mode = #tpu.pipeline_mode<synchronous>, transform_indices = @transform_6, window_bounds = array<i64: 65, 128>}, {pipeline_mode = #tpu.pipeline_mode<synchronous>, transform_indices = @transform_7, window_bounds = array<i64: 129, 784>}, {transform_indices = @transform_8, window_bounds = array<i64: 8, 784>}]} {
    %c0 = arith.constant 0 : index
    %c0_0 = arith.constant 0 : index
    %0 = vector.load %arg1[%c0, %c0_0] : memref<8x784xbf16, #tpu.memory_space<vmem>>, vector<8x784xbf16>
    %c0_1 = arith.constant 0 : index
    %c0_2 = arith.constant 0 : index
    %1 = vector.load %arg2[%c0_1, %c0_2] : memref<785x128xbf16, #tpu.memory_space<vmem>>, vector<784x128xbf16>
    %c784 = arith.constant 784 : index
    %c0_3 = arith.constant 0 : index
    %2 = vector.load %arg2[%c784, %c0_3] : memref<785x128xbf16, #tpu.memory_space<vmem>>, vector<1x128xbf16>
    %3 = arith.extf %2 : vector<1x128xbf16> to vector<1x128xf32>
    %cst = arith.constant dense<0.000000e+00> : vector<8x128xf32>
    %4 = tpu.matmul %0, %1, %cst {dimension_numbers = #tpu.dot_dimension_numbers<[1], [0], [0], [1], [0, 0, 1, 1], [], []>} : vector<8x784xbf16>, vector<784x128xbf16>, vector<8x128xf32> -> vector<8x128xf32>
    %5 = vector.broadcast %3 : vector<1x128xf32> to vector<8x128xf32>
    %6 = arith.addf %4, %5 : vector<8x128xf32>
    %cst_4 = arith.constant 0.000000e+00 : f32
    %7 = vector.broadcast %cst_4 : f32 to vector<8x128xf32>
    %8 = arith.maximumf %6, %7 : vector<8x128xf32>
    %c0_5 = arith.constant 0 : index
    %c0_6 = arith.constant 0 : index
    %9 = vector.load %arg3[%c0_5, %c0_6] : memref<129x64xbf16, #tpu.memory_space<vmem>>, vector<128x64xbf16>
    %c128 = arith.constant 128 : index
    %c0_7 = arith.constant 0 : index
    %10 = vector.load %arg3[%c128, %c0_7] : memref<129x64xbf16, #tpu.memory_space<vmem>>, vector<1x64xbf16>
    %11 = arith.extf %10 : vector<1x64xbf16> to vector<1x64xf32>
    %12 = arith.truncf %8 : vector<8x128xf32> to vector<8x128xbf16>
    %cst_8 = arith.constant dense<0.000000e+00> : vector<8x64xf32>
    %13 = tpu.matmul %12, %9, %cst_8 {dimension_numbers = #tpu.dot_dimension_numbers<[1], [0], [0], [1], [0, 0, 1, 1], [], []>} : vector<8x128xbf16>, vector<128x64xbf16>, vector<8x64xf32> -> vector<8x64xf32>
    %14 = vector.broadcast %11 : vector<1x64xf32> to vector<8x64xf32>
    %15 = arith.addf %13, %14 : vector<8x64xf32>
    %cst_9 = arith.constant 0.000000e+00 : f32
    %16 = vector.broadcast %cst_9 : f32 to vector<8x64xf32>
    %17 = arith.maximumf %15, %16 : vector<8x64xf32>
    %c0_10 = arith.constant 0 : index
    %c0_11 = arith.constant 0 : index
    %18 = vector.load %arg4[%c0_10, %c0_11] : memref<65x12xbf16, #tpu.memory_space<vmem>>, vector<64x12xbf16>
    %c64 = arith.constant 64 : index
    %c0_12 = arith.constant 0 : index
    %19 = vector.load %arg4[%c64, %c0_12] : memref<65x12xbf16, #tpu.memory_space<vmem>>, vector<1x12xbf16>
    %20 = arith.extf %19 : vector<1x12xbf16> to vector<1x12xf32>
    %21 = arith.truncf %17 : vector<8x64xf32> to vector<8x64xbf16>
    %cst_13 = arith.constant dense<0.000000e+00> : vector<8x12xf32>
    %22 = tpu.matmul %21, %18, %cst_13 {dimension_numbers = #tpu.dot_dimension_numbers<[1], [0], [0], [1], [0, 0, 1, 1], [], []>} : vector<8x64xbf16>, vector<64x12xbf16>, vector<8x12xf32> -> vector<8x12xf32>
    %23 = vector.broadcast %20 : vector<1x12xf32> to vector<8x12xf32>
    %24 = arith.addf %22, %23 : vector<8x12xf32>
    %cst_14 = arith.constant 0.000000e+00 : f32
    %25 = vector.broadcast %cst_14 : f32 to vector<8x12xf32>
    %26 = arith.maximumf %24, %25 : vector<8x12xf32>
    %c0_15 = arith.constant 0 : index
    %c0_16 = arith.constant 0 : index
    %27 = vector.load %arg5[%c0_15, %c0_16] : memref<17x12xbf16, #tpu.memory_space<vmem>>, vector<12x12xbf16>
    %c16 = arith.constant 16 : index
    %c0_17 = arith.constant 0 : index
    %28 = vector.load %arg5[%c16, %c0_17] : memref<17x12xbf16, #tpu.memory_space<vmem>>, vector<1x12xbf16>
    %29 = arith.extf %28 : vector<1x12xbf16> to vector<1x12xf32>
    %30 = arith.truncf %26 : vector<8x12xf32> to vector<8x12xbf16>
    %cst_18 = arith.constant dense<0.000000e+00> : vector<8x12xf32>
    %31 = tpu.matmul %30, %27, %cst_18 {dimension_numbers = #tpu.dot_dimension_numbers<[1], [0], [0], [1], [0, 0, 1, 1], [], []>} : vector<8x12xbf16>, vector<12x12xbf16>, vector<8x12xf32> -> vector<8x12xf32>
    %32 = vector.broadcast %29 : vector<1x12xf32> to vector<8x12xf32>
    %33 = arith.addf %31, %32 : vector<8x12xf32>
    %cst_19 = arith.constant 0.000000e+00 : f32
    %34 = vector.broadcast %cst_19 : f32 to vector<8x12xf32>
    %35 = arith.maximumf %33, %34 : vector<8x12xf32>
    %c0_20 = arith.constant 0 : index
    %c0_21 = arith.constant 0 : index
    %36 = vector.load %arg6[%c0_20, %c0_21] : memref<17x64xbf16, #tpu.memory_space<vmem>>, vector<12x64xbf16>
    %c16_22 = arith.constant 16 : index
    %c0_23 = arith.constant 0 : index
    %37 = vector.load %arg6[%c16_22, %c0_23] : memref<17x64xbf16, #tpu.memory_space<vmem>>, vector<1x64xbf16>
    %38 = arith.extf %37 : vector<1x64xbf16> to vector<1x64xf32>
    %39 = arith.truncf %35 : vector<8x12xf32> to vector<8x12xbf16>
    %cst_24 = arith.constant dense<0.000000e+00> : vector<8x64xf32>
    %40 = tpu.matmul %39, %36, %cst_24 {dimension_numbers = #tpu.dot_dimension_numbers<[1], [0], [0], [1], [0, 0, 1, 1], [], []>} : vector<8x12xbf16>, vector<12x64xbf16>, vector<8x64xf32> -> vector<8x64xf32>
    %41 = vector.broadcast %38 : vector<1x64xf32> to vector<8x64xf32>
    %42 = arith.addf %40, %41 : vector<8x64xf32>
    %cst_25 = arith.constant 0.000000e+00 : f32
    %43 = vector.broadcast %cst_25 : f32 to vector<8x64xf32>
    %44 = arith.maximumf %42, %43 : vector<8x64xf32>
    %c0_26 = arith.constant 0 : index
    %c0_27 = arith.constant 0 : index
    %45 = vector.load %arg7[%c0_26, %c0_27] : memref<65x128xbf16, #tpu.memory_space<vmem>>, vector<64x128xbf16>
    %c64_28 = arith.constant 64 : index
    %c0_29 = arith.constant 0 : index
    %46 = vector.load %arg7[%c64_28, %c0_29] : memref<65x128xbf16, #tpu.memory_space<vmem>>, vector<1x128xbf16>
    %47 = arith.extf %46 : vector<1x128xbf16> to vector<1x128xf32>
    %48 = arith.truncf %44 : vector<8x64xf32> to vector<8x64xbf16>
    %cst_30 = arith.constant dense<0.000000e+00> : vector<8x128xf32>
    %49 = tpu.matmul %48, %45, %cst_30 {dimension_numbers = #tpu.dot_dimension_numbers<[1], [0], [0], [1], [0, 0, 1, 1], [], []>} : vector<8x64xbf16>, vector<64x128xbf16>, vector<8x128xf32> -> vector<8x128xf32>
    %50 = vector.broadcast %47 : vector<1x128xf32> to vector<8x128xf32>
    %51 = arith.addf %49, %50 : vector<8x128xf32>
    %cst_31 = arith.constant 0.000000e+00 : f32
    %52 = vector.broadcast %cst_31 : f32 to vector<8x128xf32>
    %53 = arith.maximumf %51, %52 : vector<8x128xf32>
    %c0_32 = arith.constant 0 : index
    %c0_33 = arith.constant 0 : index
    %54 = vector.load %arg8[%c0_32, %c0_33] : memref<129x784xbf16, #tpu.memory_space<vmem>>, vector<128x784xbf16>
    %c128_34 = arith.constant 128 : index
    %c0_35 = arith.constant 0 : index
    %55 = vector.load %arg8[%c128_34, %c0_35] : memref<129x784xbf16, #tpu.memory_space<vmem>>, vector<1x784xbf16>
    %56 = arith.extf %55 : vector<1x784xbf16> to vector<1x784xf32>
    %57 = arith.truncf %53 : vector<8x128xf32> to vector<8x128xbf16>
    %cst_36 = arith.constant dense<0.000000e+00> : vector<8x784xf32>
    %58 = tpu.matmul %57, %54, %cst_36 {dimension_numbers = #tpu.dot_dimension_numbers<[1], [0], [0], [1], [0, 0, 1, 1], [], []>} : vector<8x128xbf16>, vector<128x784xbf16>, vector<8x784xf32> -> vector<8x784xf32>
    %59 = vector.broadcast %56 : vector<1x784xf32> to vector<8x784xf32>
    %60 = arith.addf %58, %59 : vector<8x784xf32>
    %61 = math.tanh %60 : vector<8x784xf32>
    %62 = arith.truncf %61 : vector<8x784xf32> to vector<8x784xbf16>
    %c0_37 = arith.constant 0 : index
    %c0_38 = arith.constant 0 : index
    %63 = vector.load %arg9[%c0_37, %c0_38] : memref<8x784xbf16, #tpu.memory_space<vmem>>, vector<8x784xbf16>
    tpu.vector_store %arg9[%c0_37, %c0_38], %62 {strides = array<i32>} : memref<8x784xbf16, #tpu.memory_space<vmem>>, vector<8x784xbf16>,
    return
  }
  func.func @transform_0(%arg0: i32) -> (i32, i32) {
    %c0_i32 = arith.constant 0 : i32
    %c0_i32_0 = arith.constant 0 : i32
    return %arg0, %c0_i32 : i32, i32
  }
  func.func @transform_1(%arg0: i32) -> (i32, i32) {
    %c0_i32 = arith.constant 0 : i32
    %c0_i32_0 = arith.constant 0 : i32
    %c0_i32_1 = arith.constant 0 : i32
    return %c0_i32, %c0_i32_0 : i32, i32
  }
  func.func @transform_2(%arg0: i32) -> (i32, i32) {
    %c0_i32 = arith.constant 0 : i32
    %c0_i32_0 = arith.constant 0 : i32
    %c0_i32_1 = arith.constant 0 : i32
    return %c0_i32, %c0_i32_0 : i32, i32
  }
  func.func @transform_3(%arg0: i32) -> (i32, i32) {
    %c0_i32 = arith.constant 0 : i32
    %c0_i32_0 = arith.constant 0 : i32
    %c0_i32_1 = arith.constant 0 : i32
    return %c0_i32, %c0_i32_0 : i32, i32
  }
  func.func @transform_4(%arg0: i32) -> (i32, i32) {
    %c0_i32 = arith.constant 0 : i32
    %c0_i32_0 = arith.constant 0 : i32
    %c0_i32_1 = arith.constant 0 : i32
    return %c0_i32, %c0_i32_0 : i32, i32
  }
  func.func @transform_5(%arg0: i32) -> (i32, i32) {
    %c0_i32 = arith.constant 0 : i32
    %c0_i32_0 = arith.constant 0 : i32
    %c0_i32_1 = arith.constant 0 : i32
    return %c0_i32, %c0_i32_0 : i32, i32
  }
  func.func @transform_6(%arg0: i32) -> (i32, i32) {
    %c0_i32 = arith.constant 0 : i32
    %c0_i32_0 = arith.constant 0 : i32
    %c0_i32_1 = arith.constant 0 : i32
    return %c0_i32, %c0_i32_0 : i32, i32
  }
  func.func @transform_7(%arg0: i32) -> (i32, i32) {
    %c0_i32 = arith.constant 0 : i32
    %c0_i32_0 = arith.constant 0 : i32
    %c0_i32_1 = arith.constant 0 : i32
    return %c0_i32, %c0_i32_0 : i32, i32
  }
  func.func @transform_8(%arg0: i32) -> (i32, i32) {
    %c0_i32 = arith.constant 0 : i32
    %c0_i32_0 = arith.constant 0 : i32
    return %arg0, %c0_i32 : i32, i32
  }
}

</mosaic_0001>

<bundles_post_ra>
// kernel: tpu_custom_call.1
= control target key start
LH: loop header
LB: loop body
LE: loop exit
PB: predicated region body
PF: predicated region fallthrough
CT: control target
= control target key end

     0   :  { %13 = vsyncpa [#allocation3], 0  ;;  %s2474_s0 = inlined_call_operand.vmem [shape: bf16[8,784], index: 0, kind: input, shape index: {}]   ;;  %s2475_s1 = inlined_call_operand.hbm [shape: bf16[785,128], index: 1, kind: input, shape index: {}]   ;;  %s2476_s2 = inlined_call_operand.vmem [shape: bf16[129,64], index: 2, kind: input, shape index: {}]   ;;  %s2477_s3 = inlined_call_operand.vmem [shape: bf16[65,12], index: 3, kind: input, shape index: {}]   ;;  %s2478_s4 = inlined_call_operand.vmem [shape: bf16[17,12], index: 4, kind: input, shape index: {}]   ;;  %s2479_s5 = inlined_call_operand.vmem [shape: bf16[17,64], index: 5, kind: input, shape index: {}]   ;;  %s2480_s6 = inlined_call_operand.vmem [shape: bf16[65,128], index: 6, kind: input, shape index: {}]   ;;  %s2481_s7 = inlined_call_operand.hbm [shape: bf16[129,784], index: 7, kind: input, shape index: {}]   ;;  %s2482_s8 = inlined_call_operand.hbm [shape: bf16[8,784], index: 8, kind: output, shape index: {}]  }
   0x1   :  { %14 = vsyncpa [#allocation6], 0 }
   0x2   :  { %15 = vsyncpa [#allocation4], 0  ;;  %s2240_s27 = smov [#allocation2]   ;;  %s2168_s9 = scalar_lea.hbm %s2475_s1, 6336 }
   0x3   :  { %s23_s28 = sshll.u32 %s2240_s27, 4  ;;  %p2169_p0 = scmp.ne.s32.totalorder %s2475_s1, %s2168_s9  ;;  %s24_s28 = int_to_ptr.vmem [resolvable:$true] %s23_s28 }
   0x4   :  { %p2172_p1 = scmp.lt.u32.totalorder %s2168_s9, %s2475_s1 }
   0x6   :  { %p2174_p2 = pnand %p2172_p1, %p2169_p0 }
   0x8   :  { %2177 = shalt.err (!%p2174_p2)
}
   0x9   :  { %s2178_s14 = scalar_lea.vmem %s24_s28, 6336  ;;  %p2183_p4 = scmp.lt.s32.totalorder %s24_s28, %s24_s28 }
   0xa   :  { %p2179_p3 = scmp.ne.s32.totalorder %s24_s28, %s2178_s14  ;;  %p2184_p5 = scmp.lt.s32.totalorder %s2178_s14, %s2178_s14 }
   0xc   :  { %p2185_p6 = por %p2184_p5, %p2183_p4 }
   0xe   :  { %p2186_p7 = pnand %p2185_p6, %p2179_p3 }
  0x10   :  { %2189 = shalt.err (!%p2186_p7)
}
  0x11   :  { %s2241_s15 = smov 64   ;;  %s2242_s16 = smov 4  }
  0x12   :  { %29 = dma.hbm_to_vmem [thread:$0]  %s2475_s1, 6336, %s24_s28, [#allocation3], %s2241_s15, %s2241_s15, %s2242_s16  }
  0x13   :  { %s2243_s19 = smov [#allocation5]   ;;  %s2190_s23 = scalar_lea.hbm %s2481_s7, 7616 }
  0x14   :  { %s45_s20 = sshll.u32 %s2243_s19, 4  ;;  %p2191_p8 = scmp.ne.s32.totalorder %s2481_s7, %s2190_s23  ;;  %s46_s20 = int_to_ptr.vmem [resolvable:$true] %s45_s20 }
  0x15   :  { %p2194_p9 = scmp.lt.u32.totalorder %s2190_s23, %s2481_s7 }
  0x17   :  { %p2196_p10 = pnand %p2194_p9, %p2191_p8 }
  0x19   :  { %2199 = shalt.err (!%p2196_p10)
}
  0x1a   :  { %s2200_s29 = scalar_lea.vmem %s46_s20, 7616  ;;  %p2205_p12 = scmp.lt.s32.totalorder %s46_s20, %s46_s20 }
  0x1b   :  { %p2201_p11 = scmp.ne.s32.totalorder %s46_s20, %s2200_s29  ;;  %p2206_p13 = scmp.lt.s32.totalorder %s2200_s29, %s2200_s29 }
  0x1d   :  { %p2207_p0 = por %p2206_p13, %p2205_p12 }
  0x1f   :  { %p2208_p1 = pnand %p2207_p0, %p2201_p11 }
  0x21   :  { %2211 = shalt.err (!%p2208_p1)
}
  0x22   :  { %s2244_s1 = smov 448   ;;  %s2245_s28 = smov 28  }
  0x23   :  { %51 = dma.hbm_to_vmem [thread:$0]  %s2481_s7, 7616, %s46_s20, [#allocation6], %s2244_s1, %s2244_s1, %s2245_s28  }
  0x24   :  { %2234 = dma.done.wait [#allocation3], 6336  }
  0x25   :  { %2235 = vsyncadd [#allocation3], 4294960960 }
  0x26   :  { %2236 = dma.done.wait [#allocation6], 7616  }
  0x27   :  { %2237 = vsyncadd [#allocation6], 4294959680  ;;  %v2000_v0 = vld [vmem:[#allocation2 + $0x40] sm:$0xff]   ;;  %v2004_v4 = vld [vmem:[#allocation2 + $0x48] sm:$0xff]   ;;  %v2246_v43 = vmov 0.0   ;;  %vm2247_vm0 = vmmov 0  }
  0x28   :  { %v2001_v1 = vld [vmem:[#allocation2] sm:$0xff]   ;;  %1808 = vmatprep.subr.bf16.mxu0 %v2000_v0  ;;  %v2005_v5 = vld [vmem:[#allocation2 + $0x8] sm:$0xff]   ;;  %v2008_v8 = vld [vmem:[#allocation2 + $0x50] sm:$0xff]   ;;  %vm485_vm1 = vcmask 130048   ;;  %vm864_vm2 = vcmask 1045504   ;;  %vm801_vm3 = vcmask 523264  }
  0x29   :  { %v2002_v2 = vld [vmem:[#allocation2 + $0xc0] sm:$0xff]   ;;  %1809 = vmatpush3.bf16.msra.mxu0 %v2001_v1  ;;  %v2006_v6 = vld [vmem:[#allocation2 + $0xc8] sm:$0xff]   ;;  %v2009_v9 = vld [vmem:[#allocation2 + $0x10] sm:$0xff]   ;;  %vm860_vm4 = vcmask 97280   ;;  %vm1647_vm5 = vcmask 125952  }
  0x2a   :  { %v2003_v3 = vld [vmem:[#allocation2 + $0x80] sm:$0xff]   ;;  %1830 = vmatprep.subr.bf16.mxu1 %v2002_v2  ;;  %1810 = vmatprep.subr.bf16.mxu0 %v2004_v4  ;;  %v2007_v7 = vld [vmem:[#allocation2 + $0x88] sm:$0xff]   ;;  %v2010_v10 = vld [vmem:[#allocation2 + $0xd0] sm:$0xff]  }
  0x2b   :  { %1831 = vmatpush3.bf16.msra.mxu1 %v2003_v3  ;;  %v2011_v11 = vld [vmem:[#allocation2 + $0x90] sm:$0xff]   ;;  %v2012_v12 = vld [vmem:[#allocation2 + $0x58] sm:$0xff]   ;;  %v2016_v16 = vld [vmem:[#allocation2 + $0x60] sm:$0xff]  }
  0x2c   :  { %1832 = vmatprep.subr.bf16.mxu1 %v2006_v6  ;;  %v2013_v13 = vld [vmem:[#allocation2 + $0x18] sm:$0xff]   ;;  %v2017_v17 = vld [vmem:[#allocation2 + $0x20] sm:$0xff]   ;;  %v2020_v20 = vld [vmem:[#allocation2 + $0x68] sm:$0xff]   ;;  %v163_v6 = vlaneseq }
  0x2d   :  { %1811 = vmatpush3.bf16.msra.mxu0 %v2005_v5  ;;  %v2014_v14 = vld [vmem:[#allocation2 + $0xd8] sm:$0xff]   ;;  %v2018_v18 = vld [vmem:[#allocation2 + $0xe0] sm:$0xff]   ;;  %v2021_v21 = vld [vmem:[#allocation2 + $0x28] sm:$0xff]  }
  0x2e   :  { %1812 = vmatprep.subr.bf16.mxu0 %v2008_v8  ;;  %v2015_v15 = vld [vmem:[#allocation2 + $0x98] sm:$0xff]   ;;  %v2019_v19 = vld [vmem:[#allocation2 + $0xa0] sm:$0xff]   ;;  %v2022_v22 = vld [vmem:[#allocation2 + $0xe8] sm:$0xff]  }
  0x2f   :  { %1833 = vmatpush3.bf16.msra.mxu1 %v2007_v7  ;;  %v2023_v23 = vld [vmem:[#allocation2 + $0xa8] sm:$0xff]   ;;  %v2024_v24 = vld [vmem:[#allocation2 + $0x70] sm:$0xff]   ;;  %v2028_v28 = vld [vmem:[#allocation2 + $0x78] sm:$0xff]   ;;  %v164_v7 = vshrl.u32 %v163_v6, 7 }
  0x30   :  { %1834 = vmatprep.subr.bf16.mxu1 %v2010_v10  ;;  %v2025_v25 = vld [vmem:[#allocation2 + $0x30] sm:$0xff]   ;;  %v2029_v29 = vld [vmem:[#allocation2 + $0x38] sm:$0xff]   ;;  %v59_v31 = vld [vmem:[%s2474_s0] sm:$0xff] }
  0x31   :  { %1813 = vmatpush3.bf16.msra.mxu0 %v2009_v9  ;;  %v2026_v26 = vld [vmem:[#allocation2 + $0xf0] sm:$0xff]   ;;  %v2030_v30 = vld [vmem:[#allocation2 + $0xf8] sm:$0xff]   ;;  %v1665_v32 = vcombine.low %v59_v31, %v59_v31  ;;  %v1666_v33 = vcombine.high %v59_v31, %v59_v31  ;;  %v2034_v35 = vld [vmem:[#allocation2 + $0x140] sm:$0xff]   ;;  %v2380_v10 = vsub.s32 0, %v164_v7 }
  0x32   :  { %1814 = vmatprep.subr.bf16.mxu0 %v2012_v12  ;;  %v2027_v27 = vld [vmem:[#allocation2 + $0xb0] sm:$0xff]   ;;  %v2033_v34 = vld [vmem:[#allocation2 + $0xb8] sm:$0xff]   ;;  %v60_v36 = vld [vmem:[%s2474_s0 + $0x8] sm:$0xff] }
  0x33   :  { %1835 = vmatpush3.bf16.msra.mxu1 %v2011_v11  ;;  %521 = vmatprep.mubr.bf16.mxu0 %v1666_v33  ;;  %v1667_v37 = vcombine.low %v60_v36, %v60_v36  ;;  %v1668_v38 = vcombine.high %v60_v36, %v60_v36  ;;  %v2037_v39 = vld [vmem:[#allocation2 + $0x100] sm:$0xff]   ;;  %v2038_v40 = vld [vmem:[#allocation2 + $0x148] sm:$0xff]   ;;  %v2040_v42 = vld [vmem:[#allocation2 + $0x150] sm:$0xff]  }
  0x34   :  { %1836 = vmatprep.subr.bf16.mxu1 %v2014_v14  ;;  %v2039_v41 = vld [vmem:[#allocation2 + $0x108] sm:$0xff]   ;;  %v2041_v44 = vld [vmem:[#allocation2 + $0x110] sm:$0xff]   ;;  %v2042_v45 = vld [vmem:[#allocation2 + $0x158] sm:$0xff]  }
  0x35   :  { %1815 = vmatpush3.bf16.msra.mxu0 %v2013_v13  ;;  %561 = vmatprep.mubr.bf16.mxu1 %v1668_v38  ;;  %v2043_v46 = vld [vmem:[#allocation2 + $0x118] sm:$0xff]   ;;  %v2044_v47 = vld [vmem:[#allocation2 + $0x160] sm:$0xff]   ;;  %v2046_v49 = vld [vmem:[#allocation2 + $0x168] sm:$0xff]  }
  0x36   :  { %1816 = vmatprep.subr.bf16.mxu0 %v2016_v16  ;;  %v2045_v48 = vld [vmem:[#allocation2 + $0x120] sm:$0xff]   ;;  %v61_v51 = vld [vmem:[%s2474_s0 + $0x10] sm:$0xff]  ;;  %v2047_v52 = vld [vmem:[#allocation2 + $0x128] sm:$0xff]  }
  0x37   :  { %1837 = vmatpush3.bf16.msra.mxu1 %v2015_v15  ;;  %v2052_v50 = vld [vmem:[#allocation2 + $0x180] sm:$0xff]   ;;  %v1670_v53 = vcombine.high %v61_v51, %v61_v51  ;;  %v2055_v54 = vld [vmem:[%s2474_s0 + $0x18] ss:$0 sps:$4 sm:$0xff]   ;;  %v2048_v55 = vld [vmem:[#allocation2 + $0x170] sm:$0xff]   ;;  %v1669_v59 = vcombine.low %v61_v51, %v61_v51 }
  0x38   :  { %1838 = vmatprep.subr.bf16.mxu1 %v2018_v18  ;;  %v2049_v56 = vld [vmem:[#allocation2 + $0x130] sm:$0xff]   ;;  %v2050_v57 = vld [vmem:[#allocation2 + $0x178] sm:$0xff]   ;;  %v2056_v60 = vld [vmem:[%s2476_s2] sm:$0xff]  }
  0x39   :  { %1817 = vmatpush3.bf16.msra.mxu0 %v2017_v17  ;;  %v2051_v58 = vld [vmem:[#allocation2 + $0x138] sm:$0xff]   ;;  %v2057_v61 = vld [vmem:[%s2476_s2 + $0x8] sm:$0xff]   ;;  %v2058_v62 = vld [vmem:[%s2476_s2 + $0x10] sm:$0xff]  }
  0x3a   :  { %1818 = vmatprep.subr.bf16.mxu0 %v2020_v20  ;;  %v2059_v63 = vld [vmem:[%s2476_s2 + $0x18] sm:$0xff]   ;;  %v2060_v0 = vld [vmem:[%s2476_s2 + $0x20] sm:$0xff]   ;;  %v2061_v1 = vld [vmem:[%s2476_s2 + $0x28] sm:$0xff]  }
  0x3b   :  { %1839 = vmatpush3.bf16.msra.mxu1 %v2019_v19  ;;  %v2062_v2 = vld [vmem:[%s2476_s2 + $0x30] sm:$0xff]   ;;  %v2063_v3 = vld [vmem:[%s2476_s2 + $0x38] sm:$0xff]   ;;  %v2064_v4 = vld [vmem:[%s2477_s3] sm:$0xff]  }
  0x3c   :  { %1840 = vmatprep.subr.bf16.mxu1 %v2022_v22  ;;  %v2065_v5 = vld [vmem:[%s2477_s3 + $0x8] sm:$0xff]   ;;  %v2067_v38 = vld [vmem:[%s2477_s3 + $0x18] sm:$0xff]  }
  0x3d   :  { %1819 = vmatpush3.bf16.msra.mxu0 %v2021_v21  ;;  %v161_v8 = vld [vmem:[#allocation2 + $0x188] sm:$0x1] }
  0x3e   :  { %1820 = vmatprep.subr.bf16.mxu0 %v2024_v24  ;;  %v162_v9 = vunpack.c.l.bf16 %v161_v8 }
  0x3f   :  { %1841 = vmatpush3.bf16.msra.mxu1 %v2023_v23 }
  0x40   :  { %1842 = vmatprep.subr.bf16.mxu1 %v2026_v26  ;;  %v166_v12 = vrot.slane %v162_v9, %v2380_v10 }
  0x41   :  { %1821 = vmatpush3.bf16.msra.mxu0 %v2025_v25 }
  0x42   :  { %1822 = vmatprep.subr.bf16.mxu0 %v2028_v28 }
  0x43   :  { %1843 = vmatpush3.bf16.msra.mxu1 %v2027_v27 }
  0x44   :  { %1844 = vmatprep.subr.bf16.mxu1 %v2030_v30 }
  0x45   :  { %1823 = vmatpush3.bf16.msra.mxu0 %v2029_v29 }
  0x46   :  { %1852 = vmatprep.subr.bf16.mxu0 %v2034_v35 }
  0x47   :  { %1845 = vmatpush3.bf16.msra.mxu1 %v2033_v34 }
  0x48   :  { %522 = vmatmul.mubr.bf16.vlgmr.msra.gmra.mrb[0].mxu0 %v1665_v32  ;;  %1908 = vmatprep.subr.bf16.mxu1 %v2246_v43 }
  0x49   :  { %1853 = vmatpush3.bf16.msra.mxu0 %v2037_v39  ;;  %601 = vmatprep.mubr.bf16.mxu0 %v1670_v53  ;;  %v2068_v39 = vld [vmem:[%s2478_s4] sm:$0x3f]  }
  0x4a   :  { %562 = vmatmul.mubr.bf16.vlgmr.msra.gmra.mrb[0].mxu1 %v1667_v37  ;;  %1854 = vmatprep.subr.bf16.mxu0 %v2038_v40  ;;  %v2066_v37 = vld [vmem:[%s2477_s3 + $0x10] sm:$0xff]   ;;  %v866_v40 = vsel %vm864_vm2, %v2068_v39, 0 }
  0x4b   :  { %1910 = vmatprep.mubr.msk.bf16.mxu1 %vm2247_vm0, %v2246_v43  ;;  %1909 = vmatpush3.bf16.msra.mxu1 %v2052_v50  ;;  %v2077_v39 = vld [vmem:[#allocation5 + $0x8] ss:$28 sps:$4 sm:$0xff]  }
  0x4c   :  { %1914 = vmatprep.subr.bf16.mxu1 %v2246_v43 }
  0x4d   :  { %1855 = vmatpush3.bf16.msra.mxu0 %v2039_v41  ;;  %v666_v41 = vld [vmem:[%s2476_s2 + $0x40] sm:$0x1] }
  0x4e   :  { %1856 = vmatprep.subr.bf16.mxu0 %v2040_v42  ;;  %v667_v42 = vunpack.c.l.bf16 %v666_v41  ;;  %v2085_v41 = vld [vmem:[#allocation5 + $0x44] ss:$28 sps:$4 sm:$0xff]  }
  0x51   :  { %1857 = vmatpush3.bf16.msra.mxu0 %v2041_v44  ;;  %v672_v44 = vrot.slane %v667_v42, %v2380_v10  ;;  %v2083_v42 = vld [vmem:[#allocation5 + $0x40] ss:$28 sps:$4 sm:$0xff]  }
  0x52   :  { %1858 = vmatprep.subr.bf16.mxu0 %v2042_v45  ;;  %1911 = vmatmul.mubr.msk.bf16.vlgmr.msra.gmra.mrb[4].mxu1 %vm485_vm1, %v2055_v54  ;;  %v770_v54 = vld [vmem:[%s2477_s3 + $0x20] sm:$0x1] }
  0x53   :  { %1930 = vmatprep.mubr.msk.bf16.mxu1 %vm2247_vm0, %v2246_v43  ;;  %1915 = vmatpush3.bf16.msra.mxu1 %v2056_v60 }
  0x54   :  { %1916 = vmatprep.subr.bf16.mxu1 %v2246_v43 }
  0x55   :  { %1859 = vmatpush3.bf16.msra.mxu0 %v2043_v46 }
  0x56   :  { %1860 = vmatprep.subr.bf16.mxu0 %v2044_v47 }
  0x57   :  { %1917 = vmatpush3.bf16.msra.mxu1 %v2057_v61 }
  0x58   :  { %1918 = vmatprep.subr.bf16.mxu1 %v2246_v43 }
  0x59   :  { %1861 = vmatpush3.bf16.msra.mxu0 %v2045_v48 }
  0x5a   :  { %1862 = vmatprep.subr.bf16.mxu0 %v2046_v49 }
  0x5b   :  { %1919 = vmatpush3.bf16.msra.mxu1 %v2058_v62 }
  0x5c   :  { %1920 = vmatprep.subr.bf16.mxu1 %v2246_v43 }
  0x5d   :  { %1863 = vmatpush3.bf16.msra.mxu0 %v2047_v52  ;;  %v2069_v52 = vld [vmem:[%s2479_s5] sm:$0x3f]  }
  0x5e   :  { %1864 = vmatprep.subr.bf16.mxu0 %v2048_v55  ;;  %v927_v53 = vsel %vm864_vm2, %v2069_v52, 0  ;;  %v771_v55 = vunpack.c.l.bf16 %v770_v54  ;;  %v2115_v52 = vld [vmem:[#allocation5 + $0x15c] ss:$28 sps:$4 sm:$0xff]   ;;  %v2118_v54 = vld [vmem:[#allocation5 + $0x18c] ss:$28 sps:$4 sm:$0xff]  }
  0x5f   :  { %1921 = vmatpush3.bf16.msra.mxu1 %v2059_v63 }
  0x60   :  { %1922 = vmatprep.subr.bf16.mxu1 %v2246_v43 }
  0x61   :  { %1865 = vmatpush3.bf16.msra.mxu0 %v2049_v56  ;;  %v776_v56 = vrot.slane %v771_v55, %v2380_v10  ;;  %v2121_v55 = vld [vmem:[#allocation5 + $0x194] ss:$28 sps:$4 sm:$0xff]  }
  0x62   :  { %1866 = vmatprep.subr.bf16.mxu0 %v2050_v57 }
  0x63   :  { %1923 = vmatpush3.bf16.msra.mxu1 %v2060_v0  ;;  %v2070_v0 = vld [vmem:[%s2480_s6] sm:$0xff]  }
  0x64   :  { %1924 = vmatprep.subr.bf16.mxu1 %v2246_v43 }
  0x65   :  { %1867 = vmatpush3.bf16.msra.mxu0 %v2051_v58 }
  0x66   :  { %1934 = vmatprep.subr.bf16.mxu0 %v2246_v43 }
  0x67   :  { %1925 = vmatpush3.bf16.msra.mxu1 %v2061_v1  ;;  %v2071_v1 = vld [vmem:[%s2480_s6 + $0x8] sm:$0xff]  }
  0x68   :  { %602 = vmatmul.mubr.bf16.vlgmr.msra.gmra.mrb[4].mxu0 %v1669_v59  ;;  %1926 = vmatprep.subr.bf16.mxu1 %v2246_v43 }
  0x69   :  { %1942 = vmatprep.mubr.msk.bf16.mxu0 %vm2247_vm0, %v2246_v43  ;;  %1935 = vmatpush3.bf16.msra.mxu0 %v2064_v4 }
  0x6a   :  { %1936 = vmatprep.subr.bf16.mxu0 %v2246_v43 }
  0x6b   :  { %1927 = vmatpush3.bf16.msra.mxu1 %v2062_v2  ;;  %v848_v2 = vld [vmem:[%s2478_s4 + $0x8] sm:$0x1] }
  0x6c   :  { %1928 = vmatprep.subr.bf16.mxu1 %v2246_v43 }
  0x6d   :  { %1937 = vmatpush3.bf16.msra.mxu0 %v2065_v5 }
  0x6e   :  { %1938 = vmatprep.subr.bf16.mxu0 %v2246_v43 }
  0x6f   :  { %1929 = vmatpush3.bf16.msra.mxu1 %v2063_v3  ;;  %v849_v3 = vunpack.c.l.bf16 %v848_v2 }
  0x70   :  { %1946 = vmatprep.subr.bf16.mxu1 %v2246_v43 }
  0x71   :  { %1939 = vmatpush3.bf16.msra.mxu0 %v2066_v37  ;;  %v854_v4 = vrot.slane %v849_v3, %v2380_v10 }
  0x72   :  { %1940 = vmatprep.subr.bf16.mxu0 %v2246_v43 }
  0x75   :  { %1941 = vmatpush3.bf16.msra.mxu0 %v2067_v38 }
  0x76   :  { %1952 = vmatprep.subr.bf16.mxu0 %v2246_v43 }
 0x11b   :  { %v1824_v11 = vpop.f32.mrb[0].mxu0 }
 0x11c   :  { %v1825_v13 = vpop.f32.mrb[1].mxu0 }
 0x11d   :  { %v1826_v14 = vadd.f32 %v1825_v13, %v1824_v11  ;;  %v1827_v15 = vpop.f32.mrb[2].mxu0  ;;  %v1846_v16 = vpop.f32.mrb[0].mxu1  ;;  %v2072_v13 = vld [vmem:[%s2480_s6 + $0x10] sm:$0xff]  }
 0x11e   :  { %v1828_v17 = vpop.f32.mrb[3].mxu0  ;;  %v1847_v18 = vpop.f32.mrb[1].mxu1  ;;  %v2074_v15 = vld [vmem:[#allocation5] ss:$28 sps:$4 sm:$0xff]  }
 0x11f   :  { %v524_v19 = vadd.f32 %v1826_v14, %v166_v12  ;;  %v1848_v20 = vadd.f32 %v1847_v18, %v1846_v16  ;;  %v1849_v21 = vpop.f32.mrb[2].mxu1  ;;  %v2073_v14 = vld [vmem:[%s2480_s6 + $0x18] sm:$0xff]   ;;  %v2076_v16 = vld [vmem:[#allocation5 + $0x4] ss:$28 sps:$4 sm:$0xff]   ;;  %v2082_v18 = vld [vmem:[#allocation5 + $0x3c] ss:$28 sps:$4 sm:$0xff]  }
 0x120   :  { %v1850_v22 = vpop.f32.mrb[3].mxu1  ;;  %v2079_v17 = vld [vmem:[#allocation5 + $0xc] ss:$28 sps:$4 sm:$0xff]  }
 0x121   :  { %v564_v23 = vadd.f32 %v1848_v20, %v524_v19  ;;  %v2080_v19 = vld [vmem:[#allocation5 + $0x38] ss:$28 sps:$4 sm:$0xff]   ;;  %v2086_v21 = vld [vmem:[#allocation5 + $0x70] ss:$28 sps:$4 sm:$0xff]  }
 0x122   :  { %v2088_v20 = vld [vmem:[#allocation5 + $0x74] ss:$28 sps:$4 sm:$0xff]   ;;  %v2094_v22 = vld [vmem:[#allocation5 + $0xac] ss:$28 sps:$4 sm:$0xff]  }
 0x125   :  { %v643_v24 = vpop.f32.mrb[4].mxu1 }
 0x126   :  { %v1912_v25 = vpop.f32.mrb[5].mxu1 }
 0x127   :  { %v646_v26 = vpop.f32.mrb[6].mxu1  ;;  %v2098_v25 = vld [vmem:[#allocation5 + $0xe0] ss:$28 sps:$4 sm:$0xff]  }
 0x128   :  { %v1913_v27 = vpop.f32.mrb[7].mxu1  ;;  %v2106_v26 = vld [vmem:[#allocation5 + $0x11c] ss:$28 sps:$4 sm:$0xff]  }
 0x129   :  { %v2104_v27 = vld [vmem:[#allocation5 + $0x118] ss:$28 sps:$4 sm:$0xff]  }
 0x13b   :  { %v1868_v28 = vpop.f32.mrb[4].mxu0 }
 0x13c   :  { %v1869_v29 = vpop.f32.mrb[5].mxu0 }
 0x13d   :  { %v1870_v30 = vadd.f32 %v1869_v29, %v1868_v28  ;;  %v1871_v31 = vpop.f32.mrb[6].mxu0  ;;  %v2112_v28 = vld [vmem:[#allocation5 + $0x154] ss:$28 sps:$4 sm:$0xff]  }
 0x13e   :  { %v1872_v32 = vpop.f32.mrb[7].mxu0  ;;  %v2110_v29 = vld [vmem:[#allocation5 + $0x150] ss:$28 sps:$4 sm:$0xff]  }
 0x13f   :  { %v604_v33 = vadd.f32 %v1870_v30, %v564_v23  ;;  %v2092_v23 = vld [vmem:[#allocation5 + $0xa8] ss:$28 sps:$4 sm:$0xff]   ;;  %v911_v30 = vld [vmem:[%s2479_s5 + $0x8] sm:$0x1] }
 0x140   :  { %v912_v31 = vunpack.c.l.bf16 %v911_v30  ;;  %v1117_v30 = vld [vmem:[#allocation5 + $0x1c0] sm:$0x11] }
 0x141   :  { %v644_v34 = vadd.f32 %v643_v24, %v604_v33  ;;  %v2100_v24 = vld [vmem:[#allocation5 + $0xe4] ss:$28 sps:$4 sm:$0xff]  }
 0x142   :  { %v917_v32 = vrot.slane %v912_v31, %v2380_v10  ;;  %v1118_v31 = vld [vmem:[#allocation5 + $0x1c8] sm:$0x11] }
 0x143   :  { %v649_v35 = vmax.f32 %v644_v34, 0.0 }
 0x145   :  { %v668_v36 = vpack.c.bf16 %v649_v35, %v649_v35 }
 0x147   :  { %1931 = vmatmul.mubr.bf16.vlgmr.msra.gmra.mrb[8].mxu1 %v668_v36 }
 0x148   :  { %1948 = vmatprep.mubr.msk.bf16.mxu1 %vm2247_vm0, %v2246_v43  ;;  %1947 = vmatpush3.bf16.msra.mxu1 %v866_v40 }
 0x149   :  { %1958 = vmatprep.subr.bf16.mxu1 %v2246_v43 }
 0x21a   :  { %v755_v45 = vpop.f32.mrb[8].mxu1 }
 0x21b   :  { %v756_v46 = vadd.f32 %v755_v45, %v672_v44  ;;  %v1932_v47 = vpop.f32.mrb[9].mxu1  ;;  %v2091_v44 = vld [vmem:[#allocation5 + $0x7c] ss:$28 sps:$4 sm:$0xff]  }
 0x21c   :  { %v758_v48 = vpop.f32.mrb[10].mxu1  ;;  %v2089_v45 = vld [vmem:[#allocation5 + $0x78] ss:$28 sps:$4 sm:$0xff]   ;;  %v2095_v47 = vld [vmem:[#allocation5 + $0xb0] ss:$28 sps:$4 sm:$0xff]  }
 0x21d   :  { %v761_v49 = vmax.f32 %v756_v46, 0.0  ;;  %v1933_v50 = vpop.f32.mrb[11].mxu1  ;;  %v2097_v46 = vld [vmem:[#allocation5 + $0xb4] ss:$28 sps:$4 sm:$0xff]   ;;  %v2103_v48 = vld [vmem:[#allocation5 + $0xec] ss:$28 sps:$4 sm:$0xff]  }
 0x21e   :  { %v2109_v50 = vld [vmem:[#allocation5 + $0x124] ss:$28 sps:$4 sm:$0xff]  }
 0x21f   :  { %v772_v51 = vpack.c.bf16 %v761_v49, %v761_v49  ;;  %v2101_v49 = vld [vmem:[#allocation5 + $0xe8] ss:$28 sps:$4 sm:$0xff]  }
 0x221   :  { %1943 = vmatmul.mubr.msk.bf16.vlgmr.msra.gmra.mrb[8].mxu0 %vm801_vm3, %v772_v51  ;;  %v2107_v51 = vld [vmem:[#allocation5 + $0x120] ss:$28 sps:$4 sm:$0xff]  }
 0x222   :  { %1954 = vmatprep.mubr.msk.bf16.mxu0 %vm2247_vm0, %v2246_v43  ;;  %1953 = vmatpush3.bf16.msra.mxu0 %v927_v53  ;;  %v2113_v53 = vld [vmem:[#allocation5 + $0x158] ss:$28 sps:$4 sm:$0xff]  }
 0x223   :  { %1445 = vmatprep.subr.bf16.mxu0 %v2076_v16  ;;  %v2134_v16 = vld [vmem:[#allocation5 + $0xb8] ss:$28 sps:$4 sm:$0xff]  }
 0x2f4   :  { %v839_v57 = vpop.f32.mrb[8].mxu0 }
 0x2f5   :  { %v840_v58 = vadd.f32 %v839_v57, %v776_v56  ;;  %v1944_v59 = vpop.f32.mrb[9].mxu0  ;;  %v2116_v56 = vld [vmem:[#allocation5 + $0x188] ss:$28 sps:$4 sm:$0xff]   ;;  %v2119_v57 = vld [vmem:[#allocation5 + $0x190] ss:$28 sps:$4 sm:$0xff]  }
 0x2f6   :  { %v842_v60 = vpop.f32.mrb[10].mxu0  ;;  %v2248_v59 = vmov 0  }
 0x2f7   :  { %v845_v61 = vmax.f32 %v840_v58, 0.0  ;;  %v1945_v62 = vpop.f32.mrb[11].mxu0  ;;  %v2124_v58 = vld [vmem:[#allocation5 + $0x14] ss:$28 sps:$4 sm:$0xff]  }
 0x2f8   :  { %v978_v60 = vld [vmem:[%s2480_s6 + $0x20] sm:$0x1]  ;;  %s2249_s6 = smov [#allocation7]  }
 0x2f9   :  { %v850_v63 = vpack.c.bf16 %v845_v61, %v845_v61  ;;  %v979_v61 = vunpack.c.l.bf16 %v978_v60  ;;  %s1655_s7 = sshll.u32 %s2249_s6, 4  ;;  %s1656_s7 = int_to_ptr.vmem [resolvable:$true] %s1655_s7 }
 0x2fa   :  { %s2212_s10 = scalar_lea.vmem %s1656_s7, 448  ;;  %p2217_p3 = scmp.lt.s32.totalorder %s1656_s7, %s1656_s7 }
 0x2fb   :  { %1949 = vmatmul.mubr.msk.bf16.vlgmr.msra.gmra.mrb[12].mxu1 %vm860_vm4, %v850_v63  ;;  %v984_v62 = vrot.slane %v979_v61, %v2380_v10  ;;  %p2213_p2 = scmp.ne.s32.totalorder %s1656_s7, %s2212_s10  ;;  %p2218_p4 = scmp.lt.s32.totalorder %s2212_s10, %s2212_s10 }
 0x2fc   :  { %1966 = vmatprep.mubr.msk.bf16.mxu1 %vm2247_vm0, %v2246_v43  ;;  %1959 = vmatpush3.bf16.msra.mxu1 %v2070_v0 }
 0x2fd   :  { %1960 = vmatprep.subr.bf16.mxu1 %v2246_v43  ;;  %p2219_p5 = por %p2218_p4, %p2217_p3 }
 0x2ff   :  { %p2220_p6 = pnand %p2219_p5, %p2213_p2 }
 0x300   :  { %1961 = vmatpush3.bf16.msra.mxu1 %v2071_v1 }
 0x301   :  { %1962 = vmatprep.subr.bf16.mxu1 %v2246_v43 }
 0x304   :  { %1963 = vmatpush3.bf16.msra.mxu1 %v2072_v13  ;;  %v2130_v13 = vld [vmem:[#allocation5 + $0x80] ss:$28 sps:$4 sm:$0xff]  }
 0x305   :  { %1964 = vmatprep.subr.bf16.mxu1 %v2246_v43 }
 0x308   :  { %1965 = vmatpush3.bf16.msra.mxu1 %v2073_v14  ;;  %v2133_v14 = vld [vmem:[#allocation5 + $0x88] ss:$28 sps:$4 sm:$0xff]  }
 0x309   :  { %1486 = vmatprep.subr.bf16.mxu1 %v2079_v17  ;;  %v2137_v17 = vld [vmem:[#allocation5 + $0xc0] ss:$28 sps:$4 sm:$0xff]  }
 0x3ce   :  { %v902_v5 = vpop.f32.mrb[12].mxu1 }
 0x3cf   :  { %v903_v6 = vadd.f32 %v902_v5, %v854_v4  ;;  %v1950_v7 = vpop.f32.mrb[13].mxu1  ;;  %v2122_v5 = vld [vmem:[#allocation5 + $0x10] ss:$28 sps:$4 sm:$0xff]  }
 0x3d0   :  { %v905_v8 = vpop.f32.mrb[14].mxu1 }
 0x3d1   :  { %v908_v9 = vmax.f32 %v903_v6, 0.0  ;;  %v1951_v11 = vpop.f32.mrb[15].mxu1  ;;  %v2125_v6 = vld [vmem:[#allocation5 + $0x18] ss:$28 sps:$4 sm:$0xff]   ;;  %v2128_v8 = vld [vmem:[#allocation5 + $0x4c] ss:$28 sps:$4 sm:$0xff]  }
 0x3d2   :  { %v2129_v11 = vld [vmem:[#allocation5 + $0x50] ss:$28 sps:$4 sm:$0xff]  }
 0x3d3   :  { %v913_v12 = vpack.c.bf16 %v908_v9, %v908_v9  ;;  %v2126_v9 = vld [vmem:[#allocation5 + $0x48] ss:$28 sps:$4 sm:$0xff]  }
 0x3d5   :  { %1955 = vmatmul.mubr.msk.bf16.vlgmr.msra.gmra.mrb[12].mxu0 %vm860_vm4, %v913_v12  ;;  %v2132_v12 = vld [vmem:[#allocation5 + $0x84] ss:$28 sps:$4 sm:$0xff]  }
 0x3d6   :  { %1446 = vmatpush1.bf16.msra.mxu0 %v2074_v15  ;;  %1477 = vmatprep.mubr.bf16.mxu0 %v2248_v59  ;;  %v2136_v15 = vld [vmem:[#allocation5 + $0xbc] ss:$28 sps:$4 sm:$0xff]  }
 0x3d7   :  { %1447 = vmatprep.subr.bf16.mxu0 %v2082_v18  ;;  %v2140_v18 = vld [vmem:[#allocation5 + $0xf4] ss:$28 sps:$4 sm:$0xff]  }
 0x3da   :  { %1448 = vmatpush1.bf16.msra.mxu0 %v2080_v19  ;;  %v2138_v19 = vld [vmem:[#allocation5 + $0xf0] ss:$28 sps:$4 sm:$0xff]  }
 0x3db   :  { %1449 = vmatprep.subr.bf16.mxu0 %v2088_v20  ;;  %v2141_v20 = vld [vmem:[#allocation5 + $0xf8] ss:$28 sps:$4 sm:$0xff]  }
 0x3de   :  { %1450 = vmatpush1.bf16.msra.mxu0 %v2086_v21  ;;  %v2144_v21 = vld [vmem:[#allocation5 + $0x12c] ss:$28 sps:$4 sm:$0xff]  }
 0x3df   :  { %1451 = vmatprep.subr.bf16.mxu0 %v2094_v22  ;;  %v2142_v22 = vld [vmem:[#allocation5 + $0x128] ss:$28 sps:$4 sm:$0xff]  }
 0x3e2   :  { %1452 = vmatpush1.bf16.msra.mxu0 %v2092_v23  ;;  %v2145_v23 = vld [vmem:[#allocation5 + $0x130] ss:$28 sps:$4 sm:$0xff]  }
 0x3e3   :  { %1453 = vmatprep.subr.bf16.mxu0 %v2100_v24  ;;  %v2148_v24 = vld [vmem:[#allocation5 + $0x164] ss:$28 sps:$4 sm:$0xff]  }
 0x3e6   :  { %1454 = vmatpush1.bf16.msra.mxu0 %v2098_v25  ;;  %v2146_v25 = vld [vmem:[#allocation5 + $0x160] ss:$28 sps:$4 sm:$0xff]  }
 0x3e7   :  { %1455 = vmatprep.subr.bf16.mxu0 %v2106_v26  ;;  %v2149_v26 = vld [vmem:[#allocation5 + $0x168] ss:$28 sps:$4 sm:$0xff]  }
 0x3ea   :  { %1456 = vmatpush1.bf16.msra.mxu0 %v2104_v27  ;;  %v2152_v27 = vld [vmem:[#allocation5 + $0x19c] ss:$28 sps:$4 sm:$0xff]  }
 0x3eb   :  { %1457 = vmatprep.subr.bf16.mxu0 %v2112_v28  ;;  %v2150_v28 = vld [vmem:[#allocation5 + $0x198] ss:$28 sps:$4 sm:$0xff]  }
 0x3ee   :  { %1458 = vmatpush1.bf16.msra.mxu0 %v2110_v29  ;;  %v2153_v29 = vld [vmem:[#allocation5 + $0x1a0] ss:$28 sps:$4 sm:$0xff]  }
 0x3ef   :  { %1459 = vmatprep.subr.bf16.mxu0 %v2118_v54 }
 0x3f2   :  { %1460 = vmatpush1.bf16.msra.mxu0 %v2116_v56 }
 0x3f3   :  { %1527 = vmatprep.subr.bf16.mxu0 %v2124_v58  ;;  %v1119_v58 = vld [vmem:[#allocation5 + $0x1d0] sm:$0x11] }
 0x3f4   :  { %v1125_v60 = vunpack.c.l.bf16 %v1119_v58 }
 0x4a8   :  { %v963_v33 = vpop.f32.mrb[12].mxu0 }
 0x4a9   :  { %v964_v34 = vadd.f32 %v963_v33, %v917_v32  ;;  %v1956_v35 = vpop.f32.mrb[13].mxu0  ;;  %v1121_v32 = vunpack.c.l.bf16 %v1117_v30  ;;  %v1123_v33 = vunpack.c.l.bf16 %v1118_v31 }
 0x4aa   :  { %v966_v36 = vpop.f32.mrb[14].mxu0  ;;  %v1124_v35 = vunpack.c.h.bf16 %v1118_v31 }
 0x4ab   :  { %v969_v37 = vmax.f32 %v964_v34, 0.0  ;;  %v1957_v38 = vpop.f32.mrb[15].mxu0  ;;  %v1122_v34 = vunpack.c.h.bf16 %v1117_v30  ;;  %v1132_v36 = vrot.slane %v1121_v32, %v2380_v10 }
 0x4ad   :  { %v980_v40 = vpack.c.bf16 %v969_v37, %v969_v37  ;;  %v1140_v37 = vrot.slane %v1123_v33, %v2380_v10  ;;  %v1136_v38 = vrot.slane %v1122_v34, %v2380_v10 }
 0x4af   :  { %1967 = vmatmul.mubr.msk.bf16.vlgmr.msra.gmra.mrb[16].mxu1 %vm801_vm3, %v980_v40 }
 0x4b0   :  { %1487 = vmatpush1.bf16.msra.mxu1 %v2077_v39  ;;  %1518 = vmatprep.mubr.bf16.mxu1 %v2248_v59  ;;  %v1144_v39 = vrot.slane %v1124_v35, %v2380_v10 }
 0x4b1   :  { %1488 = vmatprep.subr.bf16.mxu1 %v2085_v41 }
 0x4b4   :  { %1489 = vmatpush1.bf16.msra.mxu1 %v2083_v42 }
 0x4b5   :  { %1490 = vmatprep.subr.bf16.mxu1 %v2091_v44 }
 0x4b8   :  { %1491 = vmatpush1.bf16.msra.mxu1 %v2089_v45 }
 0x4b9   :  { %1492 = vmatprep.subr.bf16.mxu1 %v2097_v46 }
 0x4bc   :  { %1493 = vmatpush1.bf16.msra.mxu1 %v2095_v47 }
 0x4bd   :  { %1494 = vmatprep.subr.bf16.mxu1 %v2103_v48 }
 0x4c0   :  { %1495 = vmatpush1.bf16.msra.mxu1 %v2101_v49 }
 0x4c1   :  { %1496 = vmatprep.subr.bf16.mxu1 %v2109_v50 }
 0x4c4   :  { %1497 = vmatpush1.bf16.msra.mxu1 %v2107_v51 }
 0x4c5   :  { %1498 = vmatprep.subr.bf16.mxu1 %v2115_v52 }
 0x4c8   :  { %1499 = vmatpush1.bf16.msra.mxu1 %v2113_v53 }
 0x4c9   :  { %1500 = vmatprep.subr.bf16.mxu1 %v2121_v55 }
 0x4cc   :  { %1501 = vmatpush1.bf16.msra.mxu1 %v2119_v57 }
 0x4cd   :  { %1970 = vmatprep.subr.bf16.mxu1 %v2246_v43 }
 0x582   :  { %v1046_v63 = vpop.f32.mrb[16].mxu1 }
 0x583   :  { %v1047_v0 = vadd.f32 %v1046_v63, %v984_v62  ;;  %v1968_v1 = vpop.f32.mrb[17].mxu1  ;;  %v1126_v62 = vunpack.c.h.bf16 %v1119_v58  ;;  %v1148_v63 = vrot.slane %v1125_v60, %v2380_v10 }
 0x584   :  { %v1049_v2 = vpop.f32.mrb[18].mxu1 }
 0x585   :  { %v1052_v3 = vmax.f32 %v1047_v0, 0.0  ;;  %v1969_v4 = vpop.f32.mrb[19].mxu1  ;;  %v1152_v1 = vrot.slane %v1126_v62, %v2380_v10 }
 0x587   :  { %v1128_v7 = vpack.c.bf16 %v1052_v3, %v1052_v3 }
 0x589   :  { %1478 = vmatmul.mubr.bf16.vlgmr.msra.gmra.mrb[16].mxu0 %v1128_v7  ;;  %1519 = vmatmul.mubr.bf16.vlgmr.msra.gmra.mrb[20].mxu1 %v1128_v7 }
 0x58a   :  { %1528 = vmatpush1.bf16.msra.mxu0 %v2122_v5  ;;  %1971 = vmatpush3.bf16.msra.mxu1 %v2125_v6 }
 0x58b   :  { %1529 = vmatprep.subr.bf16.mxu0 %v2128_v8  ;;  %1972 = vmatprep.subr.bf16.mxu1 %v2246_v43 }
 0x58c   :  { %1559 = vmatprep.mubr.bf16.mxu0 %v2248_v59  ;;  %1986 = vmatprep.mubr.msk.bf16.mxu1 %vm2247_vm0, %v2246_v43  ;;  %v1120_v59 = vld [vmem:[#allocation5 + $0x1d8] sm:$0x1] }
 0x58d   :  { %v1127_v61 = vunpack.c.l.bf16 %v1120_v59 }
 0x58e   :  { %1530 = vmatpush1.bf16.msra.mxu0 %v2126_v9  ;;  %1973 = vmatpush3.bf16.msra.mxu1 %v2129_v11 }
 0x58f   :  { %1531 = vmatprep.subr.bf16.mxu0 %v2132_v12  ;;  %1974 = vmatprep.subr.bf16.mxu1 %v2246_v43  ;;  %v1156_v0 = vrot.slane %v1127_v61, %v2380_v10 }
 0x592   :  { %1532 = vmatpush1.bf16.msra.mxu0 %v2130_v13  ;;  %1975 = vmatpush3.bf16.msra.mxu1 %v2133_v14 }
 0x593   :  { %1533 = vmatprep.subr.bf16.mxu0 %v2136_v15  ;;  %1976 = vmatprep.subr.bf16.mxu1 %v2246_v43 }
 0x596   :  { %1534 = vmatpush1.bf16.msra.mxu0 %v2134_v16  ;;  %1977 = vmatpush3.bf16.msra.mxu1 %v2137_v17 }
 0x597   :  { %1535 = vmatprep.subr.bf16.mxu0 %v2140_v18  ;;  %1978 = vmatprep.subr.bf16.mxu1 %v2246_v43 }
 0x59a   :  { %1536 = vmatpush1.bf16.msra.mxu0 %v2138_v19  ;;  %1979 = vmatpush3.bf16.msra.mxu1 %v2141_v20 }
 0x59b   :  { %1537 = vmatprep.subr.bf16.mxu0 %v2144_v21  ;;  %1980 = vmatprep.subr.bf16.mxu1 %v2246_v43 }
 0x59e   :  { %1538 = vmatpush1.bf16.msra.mxu0 %v2142_v22  ;;  %1981 = vmatpush3.bf16.msra.mxu1 %v2145_v23 }
 0x59f   :  { %1539 = vmatprep.subr.bf16.mxu0 %v2148_v24  ;;  %1982 = vmatprep.subr.bf16.mxu1 %v2246_v43 }
 0x5a2   :  { %1540 = vmatpush1.bf16.msra.mxu0 %v2146_v25  ;;  %1983 = vmatpush3.bf16.msra.mxu1 %v2149_v26 }
 0x5a3   :  { %1541 = vmatprep.subr.bf16.mxu0 %v2152_v27  ;;  %1984 = vmatprep.subr.bf16.mxu1 %v2246_v43 }
 0x5a6   :  { %1542 = vmatpush1.bf16.msra.mxu0 %v2150_v28  ;;  %1985 = vmatpush3.bf16.msra.mxu1 %v2153_v29 }
 0x5a9   :  { %1560 = vmatmul.mubr.bf16.vlgmr.msra.gmra.mrb[20].mxu0 %v1128_v7  ;;  %1987 = vmatmul.mubr.bf16.vlgmr.msra.gmra.mrb[24].mxu1 %v1128_v7 }
 0x65c   :  { %v1479_v40 = vpop.f32.mrb[16].mxu0  ;;  %v1520_v43 = vpop.f32.mrb[20].mxu1 }
 0x65d   :  { %v1480_v41 = vadd.f32 %v1479_v40, %v1132_v36  ;;  %v1521_v42 = vadd.f32 %v1520_v43, %v1140_v37  ;;  %v1481_v44 = vpop.f32.mrb[17].mxu0  ;;  %v1522_v45 = vpop.f32.mrb[21].mxu1 }
 0x65e   :  { %v1482_v46 = vadd.f32 %v1481_v44, %v1136_v38  ;;  %v1523_v47 = vadd.f32 %v1522_v45, %v1144_v39  ;;  %v1483_v48 = vpop.f32.mrb[18].mxu0  ;;  %v1524_v49 = vpop.f32.mrb[22].mxu1 }
 0x65f   :  { %2154 = vtanh.f32 %v1480_v41  ;;  %v1484_v50 = vpop.f32.mrb[19].mxu0  ;;  %v1525_v51 = vpop.f32.mrb[23].mxu1 }
 0x660   :  { %2156 = vtanh.f32 %v1521_v42 }
 0x661   :  { %2158 = vtanh.f32 %v1482_v46 }
 0x662   :  { %2160 = vtanh.f32 %v1523_v47 }
 0x669   :  { %v2155_v52 = vpop.eup %2154 }
 0x66a   :  { %v2157_v53 = vpop.eup %2156 }
 0x66b   :  { %v2159_v54 = vpop.eup %2158 }
 0x66c   :  { %v2161_v55 = vpop.eup %2160  ;;  %v1804_v56 = vpack.c.bf16 %v2159_v54, %v2155_v52 }
 0x66d   :  { %v1805_v57 = vpack.c.bf16 %v2161_v55, %v2157_v53 }
 0x66e   :  { %1644 = vst [vmem:[#allocation7] sm:$0xff] %v1804_v56 }
 0x66f   :  { %1645 = vst [vmem:[#allocation7 + $0x8] sm:$0xff] %v1805_v57 }
 0x67c   :  { %v1561_v2 = vpop.f32.mrb[20].mxu0  ;;  %v1602_v3 = vpop.f32.mrb[24].mxu1 }
 0x67d   :  { %v1562_v4 = vadd.f32 %v1561_v2, %v1148_v63  ;;  %v1603_v5 = vadd.f32 %v1602_v3, %v1156_v0  ;;  %v1563_v6 = vpop.f32.mrb[21].mxu0  ;;  %v1988_v7 = vpop.f32.mrb[25].mxu1 }
 0x67e   :  { %v1564_v8 = vadd.f32 %v1563_v6, %v1152_v1  ;;  %v1565_v9 = vpop.f32.mrb[22].mxu0  ;;  %v1605_v11 = vpop.f32.mrb[26].mxu1 }
 0x67f   :  { %2162 = vtanh.f32 %v1562_v4  ;;  %v1566_v12 = vpop.f32.mrb[23].mxu0  ;;  %v1989_v13 = vpop.f32.mrb[27].mxu1 }
 0x680   :  { %2164 = vtanh.f32 %v1603_v5 }
 0x681   :  { %2166 = vtanh.f32 %v1564_v8 }
 0x689   :  { %v2163_v14 = vpop.eup %2162 }
 0x68a   :  { %v2165_v15 = vpop.eup %2164 }
 0x68b   :  { %v2167_v10 = vpop.eup %2166  ;;  %v1807_v16 = vpack.c.bf16 %v2165_v15, %v2165_v15 }
 0x68c   :  { %v1806_v17 = vpack.c.bf16 %v2167_v10, %v2163_v14 }
 0x68d   :  { %1648 = vst.msk [vmem:[#allocation7 + $0x18] sm:$0xf] %vm1647_vm5, %v1807_v16 }
 0x68e   :  { %1646 = vst [vmem:[#allocation7 + $0x10] sm:$0xff] %v1806_v17 }
 0x68f   :  { %2223 = shalt.err (!%p2220_p6)
}
 0x690   :  { %s2224_s13 = scalar_lea.hbm %s2482_s8, 448 }
 0x691   :  { %p2225_p7 = scmp.ne.s32.totalorder %s2482_s8, %s2224_s13  ;;  %p2228_p8 = scmp.lt.u32.totalorder %s2224_s13, %s2482_s8 }
 0x693   :  { %p2230_p9 = pnand %p2228_p8, %p2225_p7 }
 0x695   :  { %2233 = shalt.err (!%p2230_p9)
}
 0x696   :  { %1658 = dma.vmem_to_hbm [thread:$0]  %s1656_s7, 448, %s2482_s8, [#allocation4]  }
 0x697   :  { %2238 = dma.done.wait [#allocation4], 448  }
 0x698   :  { %2239 = vsyncadd [#allocation4], 4294966848 }
 0x699   :  { %1662 = vsyncpa [#allocation3], 1 }
 0x69a   :  { %1663 = vsyncpa [#allocation6], 1 }
 0x69b   :  { %1664 = vsyncpa [#allocation4], 1 }

</bundles_post_ra>
